<compile_context>
chip_gen: v6e
topology: v6e:2x2x1
jax: 0.10.0
libtpu: 0.0.40
codegen_flags: <defaults>
</compile_context>

<pallas_src>
import jax
import jax.numpy as jnp
from jax import lax
from jax.experimental import pallas as pl
from jax.experimental.pallas import tpu as pltpu

_EPS = 1e-5


def encoder_layer_kernel(x_ref, rtot_ref, tri_ref,
                         wm_ref, bm_ref,                    # fused ssm|ssm_r proj
                         g1_ref, be1_ref,                   # norm1
                         w1_ref, b1_ref, w2_ref, b2_ref,    # conv1 / conv2 (k=1)
                         g2_ref, be2_ref,                   # norm2
                         o_ref,
                         carry_ref):                        # (1, 2D) f32 scan carry
    f32 = jnp.float32
    bf16 = jnp.bfloat16
    tl, d = o_ref.shape[-2], o_ref.shape[-1]

    l = pl.program_id(1)

    @pl.when(l == 0)
    def _():
        carry_ref[...] = jnp.zeros_like(carry_ref)

    x = x_ref[0].astype(f32)        # (tl, d) residual path in f32
    xb = x_ref[0].astype(bf16)      # bf16 operand for the MXU

    # Fused pointwise projection u = [u_f | u_r]; 1/L is pre-folded into the
    # weights/bias, f32 accumulation on the MXU.
    u = jnp.dot(xb, wm_ref[...], preferred_element_type=f32) + bm_ref[...]

    # Within-tile inclusive forward prefix sums of BOTH halves via one
    # (tl, tl) lower-triangular bf16 matmul on the (otherwise idle) MXU.
    s = jnp.dot(tri_ref[...], u.astype(bf16), preferred_element_type=f32)

    # Add carry from preceding L tiles -> global forward cumsums; update carry.
    fwd = carry_ref[...] + s
    carry_ref[...] = fwd[tl - 1:tl, :]

    # Reverse (anti-causal) cumsum of u_r via grand total - forward + diagonal.
    rev_r = rtot_ref[0] - fwd[:, d:] + u[:, d:]
    new_x = fwd[:, :d] + rev_r      # ssm(x) + ssm_r(x.flip(1)).flip(1)

    # ---- x = x + new_x ; norm1 (f32 statistics) -----------------------------
    x1 = x + new_x
    mu1 = jnp.mean(x1, axis=-1, keepdims=True)
    var1 = jnp.mean((x1 - mu1) ** 2, axis=-1, keepdims=True)
    xn = (x1 - mu1) * lax.rsqrt(var1 + _EPS) * g1_ref[...] + be1_ref[...]

    # ---- FFN: conv1(k=1) -> relu -> conv2(k=1); dropout = identity (eval) ---
    h = jnp.dot(xn.astype(bf16), w1_ref[...], preferred_element_type=f32) + b1_ref[...]
    h = jnp.maximum(h, 0.0)
    y = jnp.dot(h.astype(bf16), w2_ref[...], preferred_element_type=f32) + b2_ref[...]

    # ---- norm2(x + y) --------------------------------------------------------
    z = xn + y
    mu2 = jnp.mean(z, axis=-1, keepdims=True)
    var2 = jnp.mean((z - mu2) ** 2, axis=-1, keepdims=True)
    o_ref[0] = ((z - mu2) * lax.rsqrt(var2 + _EPS) * g2_ref[...]
                + be2_ref[...]).astype(o_ref.dtype)


def _vmem_limit_bytes(tl, d_model, d_ff):
    """Derive the scoped-VMEM limit from the per-step footprint (+ headroom)."""
    f32b, bf16b = 4, 2
    io = 2 * 2 * tl * d_model * f32b                          # x + out, double-buffered
    weights = ((2 * d_model * d_model + 2 * d_model * d_ff + tl * tl) * bf16b
               + 4 * (2 * d_model + d_ff) * f32b)             # single-buffered consts
    live = (2 * tl * 2 * d_model * f32b                       # u, s
            + tl * d_ff * (f32b + bf16b)                      # h (+ bf16 copy)
            + 5 * tl * d_model * f32b)                        # fwd/new_x/x1/xn/z slabs
    est = 2 * (io + weights + live)                           # 2x compiler headroom
    # Cap below v7x's 64 MiB physical VMEM; on v5e/v6e (128 MiB) this could be
    # raised to allow larger TL.
    return int(min(max(est, 16 * 1024 * 1024), 40 * 1024 * 1024))


def encoder_layer(x, params, *, tl=None):
    """x: [B, L, D] (f32 or bf16); params from init_params (fused, 1/L folded)."""
    B, L, D = x.shape
    w_mix, b_mix, g1, be1, w1, b1, w2, b2, g2, be2 = params
    d_ff = w1.shape[1]
    f32, bf16 = jnp.float32, jnp.bfloat16

    if tl is None:
        for cand in (256, 128):           # MXU-friendly, multiple of 8
            if L % cand == 0:
                tl = cand
                break
        else:
            tl = L
    assert L % tl == 0, f"L={L} must be divisible by tile tl={tl}"
    n_l = L // tl

    # Grand total of u_r over the whole sequence (per batch), used for the
    # reverse cumsum:  sum_i (x_i @ Wr_s + br_s) = sum(x) @ Wr_s + L * br_s.
    x_total = jnp.sum(x.astype(f32), axis=1)                                  # [B, D]
    rtot = (jnp.dot(x_total.astype(bf16), w_mix[:, D:],
                    preferred_element_type=f32)
            + float(L) * b_mix[:, D:]).reshape(B, 1, D)                       # [B,1,D] f32

    # Lower-triangular ones mask for within-tile inclusive prefix sums (MXU).
    tri = jnp.tril(jnp.ones((tl, tl), bf16))

    consts = [tri, w_mix, b_mix, g1, be1, w1, b1, w2, b2, g2, be2]

    def const_spec(p):
        nd = p.ndim
        return pl.BlockSpec(p.shape, lambda b, l, nd=nd: (0,) * nd,
                            pipeline_mode=pl.Buffered(1))   # never re-fetched

    in_specs = [pl.BlockSpec((1, tl, D), lambda b, l: (b, l, 0)),
                pl.BlockSpec((1, 1, D), lambda b, l: (b, 0, 0))]
    in_specs += [const_spec(p) for p in consts]

    return pl.pallas_call(
        encoder_layer_kernel,
        out_shape=jax.ShapeDtypeStruct((B, L, D), x.dtype),
        grid_spec=pltpu.PrefetchScalarGridSpec(
            num_scalar_prefetch=0,
            grid=(B, n_l),
            in_specs=in_specs,
            out_specs=pl.BlockSpec((1, tl, D), lambda b, l: (b, l, 0)),
            scratch_shapes=[pltpu.VMEM((1, 2 * D), jnp.float32)],
        ),
        compiler_params=pltpu.CompilerParams(
            dimension_semantics=("parallel", "arbitrary"),
            vmem_limit_bytes=_vmem_limit_bytes(tl, D, d_ff),
        ),
    )(x, rtot, *consts)


def init_params(key, d_model, d_ff, seq_len):
    ks = jax.random.split(key, 6)
    f32, bf16 = jnp.float32, jnp.bfloat16
    sd = 1.0 / jnp.sqrt(d_model)
    sf = 1.0 / jnp.sqrt(d_ff)
    # Surrogate ssm / ssm_r projections, fused along N and with the 1/seq_len
    # cumsum scaling folded in (weights bf16 for MXU + VMEM/DMA, biases f32).
    w_f = jax.random.normal(ks[0], (d_model, d_model), f32) * sd
    w_r = jax.random.normal(ks[1], (d_model, d_model), f32) * sd
    b_f = jax.random.normal(ks[2], (1, d_model), f32) * 0.01
    b_r = jax.random.normal(ks[3], (1, d_model), f32) * 0.01
    w_mix = (jnp.concatenate([w_f, w_r], axis=1) / seq_len).astype(bf16)
    b_mix = jnp.concatenate([b_f, b_r], axis=1) / seq_len
    g1 = jnp.ones((1, d_model), f32)
    be1 = jnp.zeros((1, d_model), f32)
    # conv1: Conv1d(d_model -> d_ff, k=1)  => weight used as [d_model, d_ff]
    w1 = (jax.random.normal(ks[4], (d_model, d_ff), f32) * sd).astype(bf16)
    b1 = jnp.zeros((1, d_ff), f32)
    # conv2: Conv1d(d_ff -> d_model, k=1)  => weight used as [d_ff, d_model]
    w2 = (jax.random.normal(ks[5], (d_ff, d_model), f32) * sf).astype(bf16)
    b2 = jnp.zeros((1, d_model), f32)
    g2 = jnp.ones((1, d_model), f32)
    be2 = jnp.zeros((1, d_model), f32)
    return [w_mix, b_mix, g1, be1, w1, b1, w2, b2, g2, be2]


def encoder_layer_ref(x, params):
    """Pure-JAX f32 reference of the same forward pass (same bf16 weights)."""
    w_mix, b_mix, g1, be1, w1, b1, w2, b2, g2, be2 = params
    f32 = jnp.float32
    D = x.shape[-1]
    xf = x.astype(f32)
    u = jnp.einsum("bld,de->ble", xf, w_mix.astype(f32)) + b_mix
    u_f, u_r = u[..., :D], u[..., D:]
    fwd = jnp.cumsum(u_f, axis=1)
    rev = jnp.flip(jnp.cumsum(jnp.flip(u_r, axis=1), axis=1), axis=1)
    x1 = xf + fwd + rev
    mu1 = x1.mean(-1, keepdims=True)
    var1 = ((x1 - mu1) ** 2).mean(-1, keepdims=True)
    xn = (x1 - mu1) / jnp.sqrt(var1 + _EPS) * g1 + be1
    h = jnp.maximum(jnp.einsum("bld,df->blf", xn, w1.astype(f32)) + b1, 0.0)
    y = jnp.einsum("blf,fd->bld", h, w2.astype(f32)) + b2
    z = xn + y
    mu2 = z.mean(-1, keepdims=True)
    var2 = ((z - mu2) ** 2).mean(-1, keepdims=True)
    return (z - mu2) / jnp.sqrt(var2 + _EPS) * g2 + be2


if __name__ == "__main__":
    # Small but lane-dense demo shapes (D, d_ff multiples of 128); tl=16 gives
    # two L tiles so the cross-tile prefix-sum carry path is exercised.
    B, L, D = 2, 32, 128
    d_ff = 4 * D

    key = jax.random.PRNGKey(0)
    kx, kp = jax.random.split(key)
    x = jax.random.normal(kx, (B, L, D), jnp.float32)
    params = init_params(kp, D, d_ff, L)

    out = encoder_layer(x, params, tl=16)
    out = jax.block_until_ready(out)

    assert out.shape == (B, L, D)
    assert bool(jnp.all(jnp.isfinite(out)))

    ref = encoder_layer_ref(x, params)
    err = float(jnp.max(jnp.abs(out.astype(jnp.float32) - ref)))
    assert err < 1e-1, f"max abs error vs f32 reference: {err}"

    print("KERNEL_OK")
</pallas_src>

<mosaic_0001>
module attributes {stable_mosaic.version = 11 : i64} {
  func.func @encoder_layer_kernel(%arg0: i32, %arg1: i32, %arg2: memref<1x16x128xf32, #tpu.memory_space<vmem>>, %arg3: memref<1x1x128xf32, #tpu.memory_space<vmem>>, %arg4: memref<16x16xbf16, #tpu.memory_space<vmem>>, %arg5: memref<128x256xbf16, #tpu.memory_space<vmem>>, %arg6: memref<1x256xf32, #tpu.memory_space<vmem>>, %arg7: memref<1x128xf32, #tpu.memory_space<vmem>>, %arg8: memref<1x128xf32, #tpu.memory_space<vmem>>, %arg9: memref<128x512xbf16, #tpu.memory_space<vmem>>, %arg10: memref<1x512xf32, #tpu.memory_space<vmem>>, %arg11: memref<512x128xbf16, #tpu.memory_space<vmem>>, %arg12: memref<1x128xf32, #tpu.memory_space<vmem>>, %arg13: memref<1x128xf32, #tpu.memory_space<vmem>>, %arg14: memref<1x128xf32, #tpu.memory_space<vmem>>, %arg15: memref<1x16x128xf32, #tpu.memory_space<vmem>>, %arg16: memref<1x256xf32, #tpu.memory_space<vmem>>) attributes {dimension_semantics = [#tpu.dimension_semantics<parallel>, #tpu.dimension_semantics<arbitrary>], iteration_bounds = array<i64: 2, 2>, scalar_prefetch = 0 : i64, scratch_operands = 1 : i64, tpu.core_type = #tpu.core_type<tc>, window_params = [{transform_indices = @transform_0, window_bounds = array<i64: 1, 16, 128>}, {transform_indices = @transform_1, window_bounds = array<i64: 1, 1, 128>}, {pipeline_mode = #tpu.pipeline_mode<synchronous>, transform_indices = @transform_2, window_bounds = array<i64: 16, 16>}, {pipeline_mode = #tpu.pipeline_mode<synchronous>, transform_indices = @transform_3, window_bounds = array<i64: 128, 256>}, {pipeline_mode = #tpu.pipeline_mode<synchronous>, transform_indices = @transform_4, window_bounds = array<i64: 1, 256>}, {pipeline_mode = #tpu.pipeline_mode<synchronous>, transform_indices = @transform_5, window_bounds = array<i64: 1, 128>}, {pipeline_mode = #tpu.pipeline_mode<synchronous>, transform_indices = @transform_6, window_bounds = array<i64: 1, 128>}, {pipeline_mode = #tpu.pipeline_mode<synchronous>, transform_indices = @transform_7, window_bounds = array<i64: 128, 512>}, {pipeline_mode = #tpu.pipeline_mode<synchronous>, transform_indices = @transform_8, window_bounds = array<i64: 1, 512>}, {pipeline_mode = #tpu.pipeline_mode<synchronous>, transform_indices = @transform_9, window_bounds = array<i64: 512, 128>}, {pipeline_mode = #tpu.pipeline_mode<synchronous>, transform_indices = @transform_10, window_bounds = array<i64: 1, 128>}, {pipeline_mode = #tpu.pipeline_mode<synchronous>, transform_indices = @transform_11, window_bounds = array<i64: 1, 128>}, {pipeline_mode = #tpu.pipeline_mode<synchronous>, transform_indices = @transform_12, window_bounds = array<i64: 1, 128>}, {transform_indices = @transform_13, window_bounds = array<i64: 1, 16, 128>}]} {
    %c0_i32 = arith.constant 0 : i32
    %0 = arith.cmpi eq, %arg1, %c0_i32 : i32
    %1 = arith.extui %0 : i1 to i32
    %c0_i32_0 = arith.constant 0 : i32
    %2 = arith.cmpi ne, %1, %c0_i32_0 : i32
    scf.if %2 {
      %cst_52 = arith.constant 0.000000e+00 : f32
      %97 = vector.broadcast %cst_52 : f32 to vector<1x256xf32>
      %c0_53 = arith.constant 0 : index
      %c0_54 = arith.constant 0 : index
      %98 = vector.load %arg16[%c0_53, %c0_54] : memref<1x256xf32, #tpu.memory_space<vmem>>, vector<1x256xf32>
      tpu.vector_store %arg16[%c0_53, %c0_54], %97 {strides = array<i32>} : memref<1x256xf32, #tpu.memory_space<vmem>>, vector<1x256xf32>,
    } else {
    }
    %c0 = arith.constant 0 : index
    %c0_1 = arith.constant 0 : index
    %c0_2 = arith.constant 0 : index
    %3 = vector.load %arg2[%c0, %c0_1, %c0_2] : memref<1x16x128xf32, #tpu.memory_space<vmem>>, vector<1x16x128xf32>
    %4 = vector.shape_cast %3 : vector<1x16x128xf32> to vector<16x128xf32>
    %c0_3 = arith.constant 0 : index
    %c0_4 = arith.constant 0 : index
    %c0_5 = arith.constant 0 : index
    %5 = vector.load %arg2[%c0_3, %c0_4, %c0_5] : memref<1x16x128xf32, #tpu.memory_space<vmem>>, vector<1x16x128xf32>
    %6 = vector.shape_cast %5 : vector<1x16x128xf32> to vector<16x128xf32>
    %7 = arith.truncf %6 : vector<16x128xf32> to vector<16x128xbf16>
    %c0_6 = arith.constant 0 : index
    %c0_7 = arith.constant 0 : index
    %8 = vector.load %arg5[%c0_6, %c0_7] : memref<128x256xbf16, #tpu.memory_space<vmem>>, vector<128x256xbf16>
    %cst = arith.constant dense<0.000000e+00> : vector<16x256xf32>
    %9 = tpu.matmul %7, %8, %cst {dimension_numbers = #tpu.dot_dimension_numbers<[1], [0], [0], [1], [0, 0, 1, 1], [], []>} : vector<16x128xbf16>, vector<128x256xbf16>, vector<16x256xf32> -> vector<16x256xf32>
    %c0_8 = arith.constant 0 : index
    %c0_9 = arith.constant 0 : index
    %10 = vector.load %arg6[%c0_8, %c0_9] : memref<1x256xf32, #tpu.memory_space<vmem>>, vector<1x256xf32>
    %11 = vector.broadcast %10 : vector<1x256xf32> to vector<16x256xf32>
    %12 = arith.addf %9, %11 : vector<16x256xf32>
    %c0_10 = arith.constant 0 : index
    %c0_11 = arith.constant 0 : index
    %13 = vector.load %arg4[%c0_10, %c0_11] : memref<16x16xbf16, #tpu.memory_space<vmem>>, vector<16x16xbf16>
    %14 = arith.truncf %12 : vector<16x256xf32> to vector<16x256xbf16>
    %cst_12 = arith.constant dense<0.000000e+00> : vector<16x256xf32>
    %15 = tpu.matmul %13, %14, %cst_12 {dimension_numbers = #tpu.dot_dimension_numbers<[1], [0], [0], [1], [0, 0, 1, 1], [], []>} : vector<16x16xbf16>, vector<16x256xbf16>, vector<16x256xf32> -> vector<16x256xf32>
    %c0_13 = arith.constant 0 : index
    %c0_14 = arith.constant 0 : index
    %16 = vector.load %arg16[%c0_13, %c0_14] : memref<1x256xf32, #tpu.memory_space<vmem>>, vector<1x256xf32>
    %17 = vector.broadcast %16 : vector<1x256xf32> to vector<16x256xf32>
    %18 = arith.addf %17, %15 : vector<16x256xf32>
    %19 = vector.extract_strided_slice %18 {offsets = [15, 0], sizes = [1, 256], strides = [1, 1]} : vector<16x256xf32> to vector<1x256xf32>
    %c0_15 = arith.constant 0 : index
    %c0_16 = arith.constant 0 : index
    %20 = vector.load %arg16[%c0_15, %c0_16] : memref<1x256xf32, #tpu.memory_space<vmem>>, vector<1x256xf32>
    tpu.vector_store %arg16[%c0_15, %c0_16], %19 {strides = array<i32>} : memref<1x256xf32, #tpu.memory_space<vmem>>, vector<1x256xf32>,
    %c0_17 = arith.constant 0 : index
    %c0_18 = arith.constant 0 : index
    %c0_19 = arith.constant 0 : index
    %21 = vector.load %arg3[%c0_17, %c0_18, %c0_19] : memref<1x1x128xf32, #tpu.memory_space<vmem>>, vector<1x1x128xf32>
    %22 = vector.shape_cast %21 : vector<1x1x128xf32> to vector<1x128xf32>
    %23 = vector.extract_strided_slice %18 {offsets = [0, 128], sizes = [16, 128], strides = [1, 1]} : vector<16x256xf32> to vector<16x128xf32>
    %24 = vector.broadcast %22 : vector<1x128xf32> to vector<16x128xf32>
    %25 = arith.subf %24, %23 : vector<16x128xf32>
    %26 = vector.extract_strided_slice %12 {offsets = [0, 128], sizes = [16, 128], strides = [1, 1]} : vector<16x256xf32> to vector<16x128xf32>
    %27 = arith.addf %25, %26 : vector<16x128xf32>
    %28 = vector.extract_strided_slice %18 {offsets = [0, 0], sizes = [16, 128], strides = [1, 1]} : vector<16x256xf32> to vector<16x128xf32>
    %29 = arith.addf %28, %27 : vector<16x128xf32>
    %30 = arith.addf %4, %29 : vector<16x128xf32>
    %cst_20 = arith.constant dense<0.000000e+00> : vector<16xf32>
    %31 = vector.multi_reduction <add>, %30, %cst_20 [1] : vector<16x128xf32> to vector<16xf32>
    %32 = vector.shape_cast %31 : vector<16xf32> to vector<16x1xf32>
    %cst_21 = arith.constant 1.280000e+02 : f32
    %33 = vector.broadcast %cst_21 : f32 to vector<16x1xf32>
    %34 = arith.divf %32, %33 : vector<16x1xf32>
    %35 = vector.broadcast %34 : vector<16x1xf32> to vector<16x128xf32>
    %36 = arith.subf %30, %35 : vector<16x128xf32>
    %37 = arith.mulf %36, %36 : vector<16x128xf32>
    %cst_22 = arith.constant dense<0.000000e+00> : vector<16xf32>
    %38 = vector.multi_reduction <add>, %37, %cst_22 [1] : vector<16x128xf32> to vector<16xf32>
    %39 = vector.shape_cast %38 : vector<16xf32> to vector<16x1xf32>
    %cst_23 = arith.constant 1.280000e+02 : f32
    %40 = vector.broadcast %cst_23 : f32 to vector<16x1xf32>
    %41 = arith.divf %39, %40 : vector<16x1xf32>
    %42 = vector.broadcast %34 : vector<16x1xf32> to vector<16x128xf32>
    %43 = arith.subf %30, %42 : vector<16x128xf32>
    %cst_24 = arith.constant 9.99999974E-6 : f32
    %44 = vector.broadcast %cst_24 : f32 to vector<16x1xf32>
    %45 = arith.addf %41, %44 : vector<16x1xf32>
    %46 = math.rsqrt %45 : vector<16x1xf32>
    %47 = vector.broadcast %46 : vector<16x1xf32> to vector<16x128xf32>
    %48 = arith.mulf %43, %47 : vector<16x128xf32>
    %c0_25 = arith.constant 0 : index
    %c0_26 = arith.constant 0 : index
    %49 = vector.load %arg7[%c0_25, %c0_26] : memref<1x128xf32, #tpu.memory_space<vmem>>, vector<1x128xf32>
    %50 = vector.broadcast %49 : vector<1x128xf32> to vector<16x128xf32>
    %51 = arith.mulf %48, %50 : vector<16x128xf32>
    %c0_27 = arith.constant 0 : index
    %c0_28 = arith.constant 0 : index
    %52 = vector.load %arg8[%c0_27, %c0_28] : memref<1x128xf32, #tpu.memory_space<vmem>>, vector<1x128xf32>
    %53 = vector.broadcast %52 : vector<1x128xf32> to vector<16x128xf32>
    %54 = arith.addf %51, %53 : vector<16x128xf32>
    %55 = arith.truncf %54 : vector<16x128xf32> to vector<16x128xbf16>
    %c0_29 = arith.constant 0 : index
    %c0_30 = arith.constant 0 : index
    %56 = vector.load %arg9[%c0_29, %c0_30] : memref<128x512xbf16, #tpu.memory_space<vmem>>, vector<128x512xbf16>
    %cst_31 = arith.constant dense<0.000000e+00> : vector<16x512xf32>
    %57 = tpu.matmul %55, %56, %cst_31 {dimension_numbers = #tpu.dot_dimension_numbers<[1], [0], [0], [1], [0, 0, 1, 1], [], []>} : vector<16x128xbf16>, vector<128x512xbf16>, vector<16x512xf32> -> vector<16x512xf32>
    %c0_32 = arith.constant 0 : index
    %c0_33 = arith.constant 0 : index
    %58 = vector.load %arg10[%c0_32, %c0_33] : memref<1x512xf32, #tpu.memory_space<vmem>>, vector<1x512xf32>
    %59 = vector.broadcast %58 : vector<1x512xf32> to vector<16x512xf32>
    %60 = arith.addf %57, %59 : vector<16x512xf32>
    %cst_34 = arith.constant 0.000000e+00 : f32
    %61 = vector.broadcast %cst_34 : f32 to vector<16x512xf32>
    %62 = arith.maximumf %60, %61 : vector<16x512xf32>
    %63 = arith.truncf %62 : vector<16x512xf32> to vector<16x512xbf16>
    %c0_35 = arith.constant 0 : index
    %c0_36 = arith.constant 0 : index
    %64 = vector.load %arg11[%c0_35, %c0_36] : memref<512x128xbf16, #tpu.memory_space<vmem>>, vector<512x128xbf16>
    %cst_37 = arith.constant dense<0.000000e+00> : vector<16x128xf32>
    %65 = tpu.matmul %63, %64, %cst_37 {dimension_numbers = #tpu.dot_dimension_numbers<[1], [0], [0], [1], [0, 0, 1, 1], [], []>} : vector<16x512xbf16>, vector<512x128xbf16>, vector<16x128xf32> -> vector<16x128xf32>
    %c0_38 = arith.constant 0 : index
    %c0_39 = arith.constant 0 : index
    %66 = vector.load %arg12[%c0_38, %c0_39] : memref<1x128xf32, #tpu.memory_space<vmem>>, vector<1x128xf32>
    %67 = vector.broadcast %66 : vector<1x128xf32> to vector<16x128xf32>
    %68 = arith.addf %65, %67 : vector<16x128xf32>
    %69 = arith.addf %54, %68 : vector<16x128xf32>
    %cst_40 = arith.constant dense<0.000000e+00> : vector<16xf32>
    %70 = vector.multi_reduction <add>, %69, %cst_40 [1] : vector<16x128xf32> to vector<16xf32>
    %71 = vector.shape_cast %70 : vector<16xf32> to vector<16x1xf32>
    %cst_41 = arith.constant 1.280000e+02 : f32
    %72 = vector.broadcast %cst_41 : f32 to vector<16x1xf32>
    %73 = arith.divf %71, %72 : vector<16x1xf32>
    %74 = vector.broadcast %73 : vector<16x1xf32> to vector<16x128xf32>
    %75 = arith.subf %69, %74 : vector<16x128xf32>
    %76 = arith.mulf %75, %75 : vector<16x128xf32>
    %cst_42 = arith.constant dense<0.000000e+00> : vector<16xf32>
    %77 = vector.multi_reduction <add>, %76, %cst_42 [1] : vector<16x128xf32> to vector<16xf32>
    %78 = vector.shape_cast %77 : vector<16xf32> to vector<16x1xf32>
    %cst_43 = arith.constant 1.280000e+02 : f32
    %79 = vector.broadcast %cst_43 : f32 to vector<16x1xf32>
    %80 = arith.divf %78, %79 : vector<16x1xf32>
    %81 = vector.broadcast %73 : vector<16x1xf32> to vector<16x128xf32>
    %82 = arith.subf %69, %81 : vector<16x128xf32>
    %cst_44 = arith.constant 9.99999974E-6 : f32
    %83 = vector.broadcast %cst_44 : f32 to vector<16x1xf32>
    %84 = arith.addf %80, %83 : vector<16x1xf32>
    %85 = math.rsqrt %84 : vector<16x1xf32>
    %86 = vector.broadcast %85 : vector<16x1xf32> to vector<16x128xf32>
    %87 = arith.mulf %82, %86 : vector<16x128xf32>
    %c0_45 = arith.constant 0 : index
    %c0_46 = arith.constant 0 : index
    %88 = vector.load %arg13[%c0_45, %c0_46] : memref<1x128xf32, #tpu.memory_space<vmem>>, vector<1x128xf32>
    %89 = vector.broadcast %88 : vector<1x128xf32> to vector<16x128xf32>
    %90 = arith.mulf %87, %89 : vector<16x128xf32>
    %c0_47 = arith.constant 0 : index
    %c0_48 = arith.constant 0 : index
    %91 = vector.load %arg14[%c0_47, %c0_48] : memref<1x128xf32, #tpu.memory_space<vmem>>, vector<1x128xf32>
    %92 = vector.broadcast %91 : vector<1x128xf32> to vector<16x128xf32>
    %93 = arith.addf %90, %92 : vector<16x128xf32>
    %c0_49 = arith.constant 0 : index
    %c0_50 = arith.constant 0 : index
    %c0_51 = arith.constant 0 : index
    %94 = vector.load %arg15[%c0_49, %c0_50, %c0_51] : memref<1x16x128xf32, #tpu.memory_space<vmem>>, vector<1x16x128xf32>
    %95 = vector.shape_cast %94 : vector<1x16x128xf32> to vector<16x128xf32>
    %96 = vector.shape_cast %93 : vector<16x128xf32> to vector<1x16x128xf32>
    tpu.vector_store %arg15[%c0_49, %c0_50, %c0_51], %96 {strides = array<i32>} : memref<1x16x128xf32, #tpu.memory_space<vmem>>, vector<1x16x128xf32>,
    return
  }
  func.func @transform_0(%arg0: i32, %arg1: i32) -> (i32, i32, i32) {
    %c0_i32 = arith.constant 0 : i32
    %c0_i32_0 = arith.constant 0 : i32
    return %arg0, %arg1, %c0_i32 : i32, i32, i32
  }
  func.func @transform_1(%arg0: i32, %arg1: i32) -> (i32, i32, i32) {
    %c0_i32 = arith.constant 0 : i32
    %c0_i32_0 = arith.constant 0 : i32
    %c0_i32_1 = arith.constant 0 : i32
    return %arg0, %c0_i32, %c0_i32_0 : i32, i32, i32
  }
  func.func @transform_2(%arg0: i32, %arg1: i32) -> (i32, i32) {
    %c0_i32 = arith.constant 0 : i32
    %c0_i32_0 = arith.constant 0 : i32
    %c0_i32_1 = arith.constant 0 : i32
    return %c0_i32, %c0_i32_0 : i32, i32
  }
  func.func @transform_3(%arg0: i32, %arg1: i32) -> (i32, i32) {
    %c0_i32 = arith.constant 0 : i32
    %c0_i32_0 = arith.constant 0 : i32
    %c0_i32_1 = arith.constant 0 : i32
    return %c0_i32, %c0_i32_0 : i32, i32
  }
  func.func @transform_4(%arg0: i32, %arg1: i32) -> (i32, i32) {
    %c0_i32 = arith.constant 0 : i32
    %c0_i32_0 = arith.constant 0 : i32
    %c0_i32_1 = arith.constant 0 : i32
    return %c0_i32, %c0_i32_0 : i32, i32
  }
  func.func @transform_5(%arg0: i32, %arg1: i32) -> (i32, i32) {
    %c0_i32 = arith.constant 0 : i32
    %c0_i32_0 = arith.constant 0 : i32
    %c0_i32_1 = arith.constant 0 : i32
    return %c0_i32, %c0_i32_0 : i32, i32
  }
  func.func @transform_6(%arg0: i32, %arg1: i32) -> (i32, i32) {
    %c0_i32 = arith.constant 0 : i32
    %c0_i32_0 = arith.constant 0 : i32
    %c0_i32_1 = arith.constant 0 : i32
    return %c0_i32, %c0_i32_0 : i32, i32
  }
  func.func @transform_7(%arg0: i32, %arg1: i32) -> (i32, i32) {
    %c0_i32 = arith.constant 0 : i32
    %c0_i32_0 = arith.constant 0 : i32
    %c0_i32_1 = arith.constant 0 : i32
    return %c0_i32, %c0_i32_0 : i32, i32
  }
  func.func @transform_8(%arg0: i32, %arg1: i32) -> (i32, i32) {
    %c0_i32 = arith.constant 0 : i32
    %c0_i32_0 = arith.constant 0 : i32
    %c0_i32_1 = arith.constant 0 : i32
    return %c0_i32, %c0_i32_0 : i32, i32
  }
  func.func @transform_9(%arg0: i32, %arg1: i32) -> (i32, i32) {
    %c0_i32 = arith.constant 0 : i32
    %c0_i32_0 = arith.constant 0 : i32
    %c0_i32_1 = arith.constant 0 : i32
    return %c0_i32, %c0_i32_0 : i32, i32
  }
  func.func @transform_10(%arg0: i32, %arg1: i32) -> (i32, i32) {
    %c0_i32 = arith.constant 0 : i32
    %c0_i32_0 = arith.constant 0 : i32
    %c0_i32_1 = arith.constant 0 : i32
    return %c0_i32, %c0_i32_0 : i32, i32
  }
  func.func @transform_11(%arg0: i32, %arg1: i32) -> (i32, i32) {
    %c0_i32 = arith.constant 0 : i32
    %c0_i32_0 = arith.constant 0 : i32
    %c0_i32_1 = arith.constant 0 : i32
    return %c0_i32, %c0_i32_0 : i32, i32
  }
  func.func @transform_12(%arg0: i32, %arg1: i32) -> (i32, i32) {
    %c0_i32 = arith.constant 0 : i32
    %c0_i32_0 = arith.constant 0 : i32
    %c0_i32_1 = arith.constant 0 : i32
    return %c0_i32, %c0_i32_0 : i32, i32
  }
  func.func @transform_13(%arg0: i32, %arg1: i32) -> (i32, i32, i32) {
    %c0_i32 = arith.constant 0 : i32
    %c0_i32_0 = arith.constant 0 : i32
    return %arg0, %arg1, %c0_i32 : i32, i32, i32
  }
}

</mosaic_0001>

<bundles_post_ra>
// kernel: tpu_custom_call.1
= control target key start
LH: loop header
LB: loop body
LE: loop exit
PB: predicated region body
PF: predicated region fallthrough
CT: control target
= control target key end

     0   :  { %s2958_s0 = inlined_call_operand.hbm [shape: f32[2,32,128], index: 0, kind: input, shape index: {}]   ;;  %s2959_s1 = inlined_call_operand.hbm [shape: f32[2,1,128], index: 1, kind: input, shape index: {}]   ;;  %s2960_s2 = inlined_call_operand.hbm [shape: bf16[16,16], index: 2, kind: input, shape index: {}]   ;;  %s2961_s3 = inlined_call_operand.hbm [shape: bf16[128,256], index: 3, kind: input, shape index: {}]   ;;  %s2962_s4 = inlined_call_operand.vmem [shape: f32[1,256], index: 4, kind: input, shape index: {}]   ;;  %s2963_s5 = inlined_call_operand.vmem [shape: f32[1,128], index: 5, kind: input, shape index: {}]   ;;  %s2964_s6 = inlined_call_operand.vmem [shape: f32[1,128], index: 6, kind: input, shape index: {}]   ;;  %s2965_s7 = inlined_call_operand.hbm [shape: bf16[128,512], index: 7, kind: input, shape index: {}]   ;;  %s2966_s8 = inlined_call_operand.vmem [shape: f32[1,512], index: 8, kind: input, shape index: {}]   ;;  %s2967_s9 = inlined_call_operand.hbm [shape: bf16[512,128], index: 9, kind: input, shape index: {}]   ;;  %s2968_s10 = inlined_call_operand.vmem [shape: f32[1,128], index: 10, kind: input, shape index: {}]   ;;  %s2969_s11 = inlined_call_operand.vmem [shape: f32[1,128], index: 11, kind: input, shape index: {}]   ;;  %s2970_s12 = inlined_call_operand.vmem [shape: f32[1,128], index: 12, kind: input, shape index: {}]   ;;  %s2971_s13 = inlined_call_operand.hbm [shape: f32[2,32,128], index: 13, kind: output, shape index: {}]  }
   0x1   :  { %2988 = sst [smem:[#allocation28_spill]] %s2960_s2 }
   0x2   :  { %2989 = sst [smem:[#allocation29_spill]] %s2961_s3 }
   0x3   :  { %2990 = sst [smem:[#allocation30_spill]] %s2963_s5 }
   0x4   :  { %2991 = sst [smem:[#allocation31_spill]] %s2964_s6 }
   0x5   :  { %2992 = sst [smem:[#allocation32_spill]] %s2965_s7 }
   0x6   :  { %2993 = sst [smem:[#allocation33_spill]] %s2966_s8 }
   0x7   :  { %2994 = sst [smem:[#allocation34_spill]] %s2967_s9 }
   0x8   :  { %2995 = sst [smem:[#allocation35_spill]] %s2968_s10 }
   0x9   :  { %2996 = sst [smem:[#allocation36_spill]] %s2969_s11 }
   0xa   :  { %2997 = sst [smem:[#allocation37_spill]] %s2970_s12 }
   0xb   :  { %2998 = sst [smem:[#allocation38_spill]] %s2971_s13 }
   0xc   :  { %18 = vsyncpa [#allocation4], 0 }
   0xd   :  { %20 = vsyncpa [#allocation4 + $0x1], 0 }
   0xe   :  { %21 = vsyncpa [#allocation7], 0 }
   0xf   :  { %23 = vsyncpa [#allocation7 + $0x1], 0 }
  0x10   :  { %24 = vsyncpa [#allocation10], 0 }
  0x11   :  { %25 = vsyncpa [#allocation13], 0 }
  0x12   :  { %26 = vsyncpa [#allocation5], 0 }
  0x13   :  { %28 = vsyncpa [#allocation5 + $0x1], 0  ;;  %s2571_s25 = smov 0   ;;  %s2573_s26 = smov 0  }
  0x14   :  { %s2575_s27 = smov 0   ;;  %s2577_s28 = smov 0  }
  0x15   :  { %s2579_s29 = smov 0   ;;  %s2581_s30 = smov 0  }
  0x16   :  { %s2583_s14 = smov 0   ;;  %s2585_s15 = smov 0  }
  0x17   :  { %s2587_s16 = smov 0   ;;  %s2589_s17 = smov 0  }
  0x18   :  { %s2591_s18 = smov 0  }
  0x19 LB: > { %2999 = sst [smem:[#allocation21_spill]] %s2453_s28  ;;  %s2627_s19 = sadd.s32 4294967295, %s2481_s18   ;;  %s2481_s18 = sphi %s2591_s18, %s34_s18   ;;  %s2477_s17 = sphi %s2589_s17, %s3055_s17   ;;  %s2473_s16 = sphi %s2587_s16, %s3046_s16   ;;  %s2469_s15 = sphi %s2585_s15, %s3054_s15   ;;  %s2465_s14 = sphi %s2583_s14, %s3045_s14   ;;  %s2461_s30 = sphi %s2581_s30, %s3053_s30   ;;  %s2457_s29 = sphi %s2579_s29, %s3052_s29   ;;  %s2453_s28 = sphi %s2577_s28, %s3051_s28   ;;  %s2449_s27 = sphi %s2575_s27, %s3050_s27   ;;  %s2445_s26 = sphi %s2573_s26, %s3049_s26   ;;  %s2441_s25 = sphi %s2571_s25, %s3048_s25  }
  0x1a   : > { %3000 = sst [smem:[#allocation22_spill]] %s2469_s15  ;;  %p1756_p0 = scmp.ge.s32.totalorder %s2481_s18, 1 }
  0x1b   : > { %3001 = sst [smem:[#allocation23_spill]] %s2473_s16  ;;  %p2985_p1 = scmp.eq.s32.totalorder %s2627_s19, 0 }
  0x1c   : > { %p351_p2 = scmp.eq.s32.totalorder %s2627_s19, 3  ;;  %p364_p3 = scmp.lt.s32.totalorder %s2481_s18, 5 }
  0x1d   : > { %s2483_s21 = smov [#allocation8]   ;;  %s2484_s24 = smov [#allocation9]  }
  0x1e   : > { %p2633_p4 = pnand %p1756_p0, %p364_p3  ;;  %s376_s22 = sshll.u32 %s2483_s21, 4  ;;  %s377_s22 = int_to_ptr.vmem [resolvable:$true] %s376_s22 }
  0x1f   : > { %s389_s13 = sshll.u32 %s2484_s24, 4  ;;  %s2196_s12 = scalar_lea.vmem %s377_s22, 128  ;;  %s390_s13 = int_to_ptr.vmem [resolvable:$true] %s389_s13 }
  0x20   : > { %p1935_p5 = pneg %p2633_p4  ;;  %p2197_p8 = scmp.ne.s32.totalorder %s377_s22, %s2196_s12 }
  0x21   : > { %p2204_p11 = scmp.lt.s32.totalorder %s377_s22, %s377_s22  ;;  %p2205_p12 = scmp.lt.s32.totalorder %s2196_s12, %s2196_s12 }
  0x22   : > { %p2641_p6 = pnand %p1935_p5, %p2985_p1 }
  0x23   : > { %p2206_p13 = por %p2205_p12, %p2204_p11 }
  0x24   : > { %p2187_p7 = pneg %p2641_p6 }
  0x26   : > { %p2199_p9 = pnand %p2197_p8, %p2187_p7 }
  0x28   : > { %p2200_p10 = pneg %p2199_p9 }
  0x2a   : > { %p2207_p0 = pnand %p2206_p13, %p2200_p10 }
  0x2c   : > { %2210 = shalt.err (!%p2207_p0)
}
  0x2d   : > { %s2973_s21 = smov 64   ;;  %s2974_s11 = smov 4  }
  0x2e   : > { %s3004_s2 = sld [smem:[#allocation28_spill]]  ;;  %s2222_s10 = scalar_lea.vmem %s390_s13, 2048 }
  0x2f   : > { %p2223_p3 = scmp.ne.s32.totalorder %s390_s13, %s2222_s10  ;;  %p2230_p9 = scmp.lt.s32.totalorder %s390_s13, %s390_s13 }
  0x30   : > { %p2231_p10 = scmp.lt.s32.totalorder %s2222_s10, %s2222_s10 }
  0x31   : > { %p2225_p5 = pnand %p2223_p3, %p2187_p7 }
  0x32   : > { %p2232_p11 = por %p2231_p10, %p2230_p9 }
  0x33   : > { %p2226_p8 = pneg %p2225_p5 }
  0x34   : > { %1938 = dma.hbm_to_vmem [thread:$0]  (!%p2641_p6), %s3004_s2, 128, %s377_s22, [#allocation7], %s2973_s21, %s2973_s21, %s2974_s11  }
  0x35   : > { %p2233_p12 = pnand %p2232_p11, %p2226_p8 }
  0x37   : > { %2236 = shalt.err (!%p2233_p12)
}
  0x38   : > { %s2975_s12 = smov 128   ;;  %s2976_s8 = smov 8  }
  0x39   : > { %s3005_s3 = sld [smem:[#allocation29_spill]]  ;;  %s2489_s24 = smov [#allocation11]  }
  0x3a   : > { %s411_s21 = sshll.u32 %s2489_s24, 4  ;;  %s412_s21 = int_to_ptr.vmem [resolvable:$true] %s411_s21 }
  0x3b   : > { %s2248_s11 = scalar_lea.vmem %s412_s21, 4096  ;;  %p2256_p5 = scmp.lt.s32.totalorder %s412_s21, %s412_s21 }
  0x3c   : > { %p2249_p13 = scmp.ne.s32.totalorder %s412_s21, %s2248_s11  ;;  %p2257_p8 = scmp.lt.s32.totalorder %s2248_s11, %s2248_s11 }
  0x3e   : > { %p2251_p0 = pnand %p2249_p13, %p2187_p7  ;;  %p2258_p9 = por %p2257_p8, %p2256_p5 }
  0x3f   : > { %1941 = dma.hbm_to_vmem [thread:$0]  (!%p2641_p6), %s3005_s3, 2048, %s390_s13, [#allocation10], %s2975_s12, %s2975_s12, %s2976_s8  }
  0x40   : > { %p2252_p3 = pneg %p2251_p0 }
  0x42   : > { %p2259_p10 = pnand %p2258_p9, %p2252_p3 }
  0x44   : > { %2262 = shalt.err (!%p2259_p10)
}
  0x45   : > { %s2490_s10 = smov 256   ;;  %s2491_s2 = smov 16  }
  0x46   : > { %s3006_s7 = sld [smem:[#allocation32_spill]]  ;;  %s2492_s22 = smov [#allocation12]  }
  0x47   : > { %s427_s24 = sshll.u32 %s2492_s22, 4  ;;  %s428_s24 = int_to_ptr.vmem [resolvable:$true] %s427_s24 }
  0x48   : > { %s2274_s12 = scalar_lea.vmem %s428_s24, 4096  ;;  %p2282_p0 = scmp.lt.s32.totalorder %s428_s24, %s428_s24 }
  0x49   : > { %p2275_p11 = scmp.ne.s32.totalorder %s428_s24, %s2274_s12  ;;  %p2283_p3 = scmp.lt.s32.totalorder %s2274_s12, %s2274_s12 }
  0x4b   : > { %p2277_p12 = pnand %p2275_p11, %p2187_p7  ;;  %p2284_p5 = por %p2283_p3, %p2282_p0 }
  0x4c   : > { %1944 = dma.hbm_to_vmem [thread:$0]  (!%p2641_p6), %s3006_s7, 4096, %s412_s21, [#allocation10], %s2490_s10, %s2490_s10, %s2491_s2  }
  0x4d   : > { %p2278_p13 = pneg %p2277_p12 }
  0x4f   : > { %p2285_p8 = pnand %p2284_p5, %p2278_p13 }
  0x51   : > { %2288 = shalt.err (!%p2285_p8)
}
  0x52   : > { %s3007_s11 = smov 4   ;;  %s3008_s8 = smov 64  }
  0x53   : > { %s3009_s9 = sld [smem:[#allocation34_spill]]  ;;  %s1755_s23 = sadd.s32 4294967294, %s2481_s18  }
  0x54   : > { %s43_s12 = sadd.s32 1, %s2473_s16  ;;  %s46_s10 = sadd.s32 1, %s2477_s17 }
  0x55   : > { %p44_p7 = scmp.ge.s32.totalorder %s43_s12, 2  ;;  %s55_s13 = sadd.s32 1, %s2461_s30 }
  0x56   : > { %p62_p9 = scmp.ne.s32.totalorder %s2461_s30, %s2457_s29  ;;  %p2986_p10 = scmp.eq.s32.totalorder %s2481_s18, 0 }
  0x57   : > { %s3057_s12 = smov (%p44_p7, %s43_s12), 0  ;;  %s3059_s10 = smov (!%p44_p7, %s46_s10), %s2477_s17 }
  0x58   : > { %3010 = sst [smem:[#allocation24_spill]] %s3057_s12  ;;  %s51_s15 = ssub.s32 %s2473_s16, %s3057_s12 }
  0x59   : > { %1947 = dma.hbm_to_vmem [thread:$0]  (!%p2641_p6), %s3009_s9, 4096, %s428_s24, [#allocation13], %s3008_s8, %s3008_s8, %s3007_s11  }
  0x5a   : > { %p2702_p11 = por %p2986_p10, %p62_p9  ;;  %p48_p6 = scmp.ge.s32.totalorder %s3059_s10, 2 }
  0x5b   : > { %p68_p12 = scmp.ne.s32.totalorder %s2457_s29, %s2453_s28  ;;  %p2710_p13 = por %p351_p2, %p62_p9 }
  0x5c   : > { %p357_p0 = scmp.eq.s32.totalorder %s1755_s23, 3  ;;  %s3061_s10 = smov (%p48_p6, %s3059_s10), 0 }
  0x5d   : > { %s3012_s22 = scalar_select %p2710_p13, 1, 0 }
  0x5e   : > { %3014 = sst [smem:[#allocation26_spill]] %s3061_s10  ;;  %p2718_p3 = por %p2985_p1, %p68_p12 }
  0x5f   : > { %3013 = sst [smem:[#allocation25_spill]] %s3012_s22  ;;  %p2722_p5 = por %p357_p0, %p68_p12 }
  0x60   : > { %s2728_s2 = ssub.s32 %s2477_s17, %s3061_s10  ;;  %p2984_p2 = scmp.lt.s32.totalorder %s2481_s18, 4 }
  0x61   : > { %s3016_s11 = scalar_select %p2722_p5, 1, 0 }
  0x62   : > { %s52_s21 = sor.u32 %s51_s15, %s2728_s2  ;;  %p79_p8 = scmp.eq.s32.totalorder %s2728_s2, 0 }
  0x63   : > { %3017 = sst [smem:[#allocation27_spill]] %s3016_s11  ;;  %p53_p7 = scmp.eq.s32.totalorder %s52_s21, 0 }
  0x64   : > { %s450_s23 = sand.u32 1, %s2461_s30   ;;  %s1763_s9 = sshll.u32 %s2473_s16, 1 }
  0x65   : > { %s1762_s3 = sshll.u32 %s450_s23, 4  ;;  %s1764_s12 = sshll.u32 %s2477_s17, 2 }
  0x66   : > { %s2735_s7 = scalar_select %p53_p7, %s2461_s30, %s55_s13  }
  0x67   : > { %s454_s28 = scalar_lea.vmem [#allocation3], %s1762_s3  ;;  %s460_s6 = sadd.s32 %s1764_s12, %s1763_s9 }
  0x68   : > { %s463_s22 = sshll.u32 %s454_s28, 4  ;;  %s1765_s11 = sshll.u32 %s460_s6, 7  ;;  %s464_s22 = int_to_ptr.vmem [resolvable:$true] %s463_s22 }
  0x69   : > { %p2743_p9 = pnand %p2984_p2, %p2702_p11  ;;  %s462_s21 = scalar_lea.hbm %s2958_s0, %s1765_s11 }
  0x6a   : > { %s451_s13 = scalar_lea.sflag [#allocation4], %s450_s23  ;;  %s2302_s16 = scalar_lea.vmem %s464_s22, 256 }
  0x6b   : > { %p2291_p6 = pneg %p2743_p9  ;;  %p2303_p12 = scmp.ne.s32.totalorder %s464_s22, %s2302_s16 }
  0x6c   : > { %s2493_s3 = smov [#allocation3]  }
  0x6d   : > { %p2305_p0 = pnand %p2303_p12, %p2291_p6  ;;  %s2307_s6 = sshll.u32 %s2493_s3, 4  ;;  %s2308_s6 = int_to_ptr.vmem [resolvable:$false] %s2307_s6 }
  0x6e   : > { %s2309_s9 = scalar_lea.vmem %s2308_s6, 512  ;;  %p2310_p11 = scmp.lt.s32.totalorder %s464_s22, %s2308_s6 }
  0x6f   : > { %p2306_p7 = pneg %p2305_p0  ;;  %p2311_p2 = scmp.lt.s32.totalorder %s2309_s9, %s2302_s16 }
  0x71   : > { %p2312_p1 = por %p2311_p2, %p2310_p11 }
  0x73   : > { %p2313_p10 = pnand %p2312_p1, %p2306_p7 }
  0x75   : > { %2316 = shalt.err (!%p2313_p10)
}
  0x76   : > { %s3019_s5 = smov 8   ;;  %s3020_s28 = smov 128  }
  0x77   : > { %1951 = dma.hbm_to_vmem [thread:$0]  (!%p2743_p9), %s462_s21, 256, %s464_s22, %s451_s13, %s3020_s28, %s3020_s28, %s3019_s5  }
  0x78   : > { %s81_s16 = sadd.s32 1, %s2449_s27  ;;  %p88_p1 = scmp.ne.s32.totalorder %s2449_s27, %s2445_s26 }
  0x79   : > { %s2763_s12 = scalar_select %p79_p8, %s2449_s27, %s81_s16  }
  0x7a   : > { %p3021_p10 = scmp.eq.s32.totalorder %s2481_s18, 0  ;;  %p94_p6 = scmp.ne.s32.totalorder %s2445_s26, %s2441_s25 }
  0x7b   : > { %s473_s10 = sand.u32 1, %s2481_s18   ;;  %s475_s8 = sand.u32 1, %s2449_s27  }
  0x7c   : > { %p90_p2 = por %p88_p1, %p3021_p10  ;;  %p3022_p12 = scmp.eq.s32.totalorder %s2627_s19, 0 }
  0x7d   : > { %s1766_s23 = sshll.u32 %s2477_s17, 4  ;;  %s476_s21 = scalar_lea.vmem [#allocation6], %s475_s8 }
  0x7e   : > { %p2773_p0 = por %p94_p6, %p3022_p12  ;;  %s481_s22 = scalar_lea.hbm %s2959_s1, %s1766_s23 }
  0x7f   : > { %s483_s13 = sshll.u32 %s476_s21, 4  ;;  %p3024_p8 = scmp.lt.s32.totalorder %s2481_s18, 4  ;;  %s484_s13 = int_to_ptr.vmem [resolvable:$true] %s483_s13 }
  0x80   : > { %s474_s25 = scalar_lea.sflag [#allocation7], %s473_s10  ;;  %s2330_s6 = scalar_lea.vmem %s484_s13, 16 }
  0x81   : > { %p2783_p9 = pnand %p3024_p8, %p90_p2  ;;  %p2331_p11 = scmp.ne.s32.totalorder %s484_s13, %s2330_s6 }
  0x82   : > { %s2494_s9 = smov [#allocation6]  }
  0x83   : > { %p2319_p7 = pneg %p2783_p9  ;;  %s2335_s5 = sshll.u32 %s2494_s9, 4  ;;  %s2336_s5 = int_to_ptr.vmem [resolvable:$false] %s2335_s5 }
  0x84   : > { %s2337_s28 = scalar_lea.vmem %s2336_s5, 32  ;;  %p2338_p6 = scmp.lt.s32.totalorder %s484_s13, %s2336_s5 }
  0x85   : > { %p2333_p1 = pnand %p2331_p11, %p2319_p7  ;;  %p2339_p12 = scmp.lt.s32.totalorder %s2337_s28, %s2330_s6 }
  0x87   : > { %p2334_p10 = pneg %p2333_p1  ;;  %p2340_p5 = por %p2339_p12, %p2338_p6 }
  0x89   : > { %p2341_p13 = pnand %p2340_p5, %p2334_p10 }
  0x8b   : > { %2344 = shalt.err (!%p2341_p13)
}
  0x8c   : > { %1954 = dma.hbm_to_vmem [thread:$0]  (!%p2783_p9), %s481_s22, 16, %s484_s13, %s474_s25  }
  0x8d   : > { %492 = sbr.rel (%p2633_p4) target bundleno = 1661 (0x67d), region = 72  ;;  %s2794_s16 = sand.u32 (!%p2633_p4), 1, %s2457_s29  }
  0x8e   : > { %s1768_s10 = sshll.u32 (!%p2633_p4), %s2794_s16, 4  ;;  %s495_s8 = scalar_lea.sflag (!%p2633_p4), [#allocation4], %s2794_s16 }
  0x8f   : > { %s2798_s23 = scalar_lea.vmem (!%p2633_p4), [#allocation3], %s1768_s10 }
  0x92   : > { %2416 = dma.done.wait (%p2718_p3), %s495_s8, 256  }
  0x93   : > { %2418 = vsyncadd (%p2718_p3), %s495_s8, 4294967040  ;;  %s503_s20 = sand.u32 1, %s2627_s19   ;;  %s505_s15 = sand.u32 1, %s2445_s26  }
  0x94   : > { %s504_s3 = scalar_lea.sflag [#allocation7], %s503_s20  ;;  %s2806_s22 = scalar_lea.vmem [#allocation6], %s505_s15 }
  0x95   : > { %2420 = dma.done.wait (%p2773_p0), %s504_s3, 16  }
  0x96   : > { %2422 = vsyncadd (%p2773_p0), %s504_s3, 4294967280  ;;  %p3026_p4 = scmp.eq.s32.totalorder %s2627_s19, 0 }
  0x98   : > { %2424 = dma.done.wait (%p3026_p4), [#allocation7], 128   ;;  %p3027_p13 = pmov %p3026_p4 }
  0x99   : > { %p3028_p3 = pmov %p3026_p4 }
  0x9a   : > { %2426 = vsyncadd (%p3027_p13), [#allocation7], 4294967168 }
  0x9b   : > { %2428 = dma.done.wait (%p3028_p3), [#allocation10], 6144   ;;  %p3029_p5 = pmov %p3028_p3 }
  0x9c   : > { %p3030_p2 = pmov %p3028_p3 }
  0x9d   : > { %2430 = vsyncadd (%p3029_p5), [#allocation10], 4294961152 }
  0x9e   : > { %2432 = dma.done.wait (%p3030_p2), [#allocation13], 4096   ;;  %p3031_p8 = pmov %p3030_p2 }
  0x9f   : > { %s2824_s24 = scalar_lea.vmem [#allocation14], %s1768_s10  ;;  %p1774_p0 = scmp.ne.s32.totalorder %s2465_s14, 0 }
  0xa0   : > { %2434 = vsyncadd (%p3031_p8), [#allocation13], 4294963200 }
  0xa1   : > { %575 = sbr.rel (%p1774_p0) target bundleno = 170 (0xaa), region = 100 }
  0xa6   : > { %v576_v0 = vlaneseq  ;;  %v2495_v1 = vmov 0.0  }
  0xa8   : > { %vm578_vm0 = vcmp.lt.s32.totalorder %v576_v0, 256 }
  0xa9   : > { %580 = vst.msk [vmem:[#allocation2] sm:$0x3] %vm578_vm0, %v2495_v1 }
  0xaa PF: > { %v2072_v2 = vld [vmem:[#allocation9 + $0x74] ss:$8 sps:$4 sm:$0xff]   ;;  %v2074_v3 = vld [vmem:[#allocation9 + $0x70] ss:$8 sps:$4 sm:$0xff]   ;;  %v2496_v4 = vmov 0   ;;  %v602_v22 = vlaneseq  ;;  %vm744_vm1 = vcmask 130048  }
  0xab   : > { %724 = vmatprep.mubr.bf16.mxu0 %v2496_v4  ;;  %780 = vmatprep.mubr.bf16.mxu1 %v2496_v4  ;;  %v2075_v5 = vld [vmem:[#allocation9 + $0x64] ss:$8 sps:$4 sm:$0xff]   ;;  %v2077_v6 = vld [vmem:[#allocation9 + $0x60] ss:$8 sps:$4 sm:$0xff]   ;;  %v2078_v7 = vld [vmem:[#allocation9 + $0x54] ss:$8 sps:$4 sm:$0xff]  }
  0xac   : > { %692 = vmatprep.subr.bf16.mxu0 %v2072_v2  ;;  %v2080_v8 = vld [vmem:[#allocation9 + $0x50] ss:$8 sps:$4 sm:$0xff]   ;;  %v2081_v9 = vld [vmem:[#allocation9 + $0x44] ss:$8 sps:$4 sm:$0xff]   ;;  %v2083_v10 = vld [vmem:[#allocation9 + $0x40] ss:$8 sps:$4 sm:$0xff]  }
  0xad   : > { %693 = vmatpush1.bf16.msra.mxu0 %v2074_v3  ;;  %v2084_v11 = vld [vmem:[#allocation9 + $0x34] ss:$8 sps:$4 sm:$0xff]   ;;  %v2086_v12 = vld [vmem:[#allocation9 + $0x30] ss:$8 sps:$4 sm:$0xff]   ;;  %v2087_v13 = vld [vmem:[#allocation9 + $0x24] ss:$8 sps:$4 sm:$0xff]  }
  0xae   : > { %694 = vmatprep.subr.bf16.mxu0 %v2075_v5  ;;  %v2089_v14 = vld [vmem:[#allocation9 + $0x20] ss:$8 sps:$4 sm:$0xff]   ;;  %v2090_v15 = vld [vmem:[#allocation9 + $0x14] ss:$8 sps:$4 sm:$0xff]   ;;  %v2092_v16 = vld [vmem:[#allocation9 + $0x10] ss:$8 sps:$4 sm:$0xff]  }
  0xaf   : > { %v2093_v17 = vld [vmem:[#allocation9 + $0x4] ss:$8 sps:$4 sm:$0xff]   ;;  %v2095_v18 = vld [vmem:[#allocation9] ss:$8 sps:$4 sm:$0xff]   ;;  %v2829_v23 = vshrl.u32 %v602_v22, 7  ;;  %v2096_v39 = vld [vmem:[#allocation8] sm:$0xff]  }
  0xb0   : > { %v581_v19 = vld [vmem:[%s2798_s23] sm:$0xff]  ;;  %v582_v20 = vld [vmem:[%s2798_s23 + $0x8] sm:$0xff]  ;;  %v2497_v41 = vmov 1966171168   ;;  %vm829_vm2 = vcmp.lt.s32.totalorder %v602_v22, 256  ;;  %s3032_s2 = sld [smem:[#allocation30_spill]] }
  0xb1   : > { %695 = vmatpush1.bf16.msra.mxu0 %v2077_v6  ;;  %v583_v21 = vpack.c.bf16 %v582_v20, %v581_v19  ;;  %v2832_v24 = vsub.s32 1, %v2829_v23  ;;  %v2835_v25 = vsub.s32 0, %v2829_v23  ;;  %v600_v27 = vld [vmem:[%s2962_s4] sm:$0x3]  ;;  %v811_v42 = vunpack.c.l.s4 %v2497_v41  ;;  %v2097_v5 = vld [vmem:[#allocation11 + $0xe0] ss:$16 sps:$4 sm:$0xff]  }
  0xb2   : > { %696 = vmatprep.subr.bf16.mxu0 %v2078_v7  ;;  %v791_v40 = vld [vmem:[#allocation2] sm:$0x3]  ;;  %v2100_v7 = vld [vmem:[#allocation11 + $0xe8] ss:$16 sps:$4 sm:$0xff]   ;;  %v2114_v22 = vld [vmem:[#allocation11 + $0xac] ss:$16 sps:$4 sm:$0xff]  }
  0xb3   : > { %v609_v29 = vrot.slane %v600_v27, %v2832_v24  ;;  %v605_v30 = vrot.slane %v600_v27, %v2835_v25  ;;  %v800_v43 = vrot.slane %v791_v40, %v2832_v24  ;;  %v1793_v46 = vld [vmem:[%s2806_s22] ss:$0 sm:$0xff]  ;;  %v812_v47 = vunpack.c.0.s8 %v811_v42  ;;  %v2112_v27 = vld [vmem:[#allocation11 + $0xa8] ss:$16 sps:$4 sm:$0xff]   ;;  %v2138_v41 = vld [vmem:[#allocation11 + $0x2c] ss:$16 sps:$4 sm:$0xff]  }
  0xb4   : > { %v796_v48 = vrot.slane %v791_v40, %v2835_v25  ;;  %v2099_v6 = vld [vmem:[#allocation11 + $0xe4] ss:$16 sps:$4 sm:$0xff]   ;;  %v2133_v42 = vld [vmem:[#allocation11 + $0x20] ss:$16 sps:$4 sm:$0xff]   ;;  %s3033_s9 = sld [smem:[#allocation31_spill]]  ;;  %s1864_s3 = sshll.u32 %s2465_s14, 1 }
  0xb5   : > { %697 = vmatpush1.bf16.msra.mxu0 %v2080_v8  ;;  %v815_v53 = vsub.s32 %v812_v47, %v2829_v23  ;;  %v2102_v8 = vld [vmem:[#allocation11 + $0xec] ss:$16 sps:$4 sm:$0xff]   ;;  %v2135_v40 = vld [vmem:[#allocation11 + $0x24] ss:$16 sps:$4 sm:$0xff]   ;;  %v2142_v47 = vld [vmem:[#allocation11 + $0x8] ss:$16 sps:$4 sm:$0xff]  }
  0xb6   : > { %698 = vmatprep.subr.bf16.mxu0 %v2081_v9  ;;  %s3034_s10 = sld [smem:[#allocation33_spill]]  ;;  %s1606_s5 = sshll.u32 %s2824_s24, 4  ;;  %s2895_s5 = int_to_ptr.vmem [resolvable:$true] %s1606_s5 }
  0xb7   : > { %s3035_s20 = sld [smem:[#allocation35_spill]] }
  0xb8   : > { %s3036_s15 = sld [smem:[#allocation22_spill]] }
  0xb9   : > { %699 = vmatpush1.bf16.msra.mxu0 %v2083_v10  ;;  %s3037_s21 = sld [smem:[#allocation36_spill]] }
  0xba   : > { %700 = vmatprep.subr.bf16.mxu0 %v2084_v11  ;;  %s3038_s25 = sld [smem:[#allocation37_spill]] }
  0xbb   : > { %s3040_s8 = sld [smem:[#allocation38_spill]] }
  0xbd   : > { %701 = vmatpush1.bf16.msra.mxu0 %v2086_v12 }
  0xbe   : > { %702 = vmatprep.subr.bf16.mxu0 %v2087_v13  ;;  %s1865_s22 = sshll.u32 %s3036_s15, 2  ;;  %s2345_s15 = scalar_lea.vmem %s2895_s5, 256 }
  0xbf   : > { %s1603_s6 = sadd.s32 %s1865_s22, %s1864_s3  ;;  %p2346_p9 = scmp.ne.s32.totalorder %s2895_s5, %s2345_s15 }
  0xc0   : > { %s1866_s14 = sshll.u32 %s1603_s6, 7  ;;  %s2498_s3 = smov [#allocation14]  }
  0xc1   : > { %703 = vmatpush1.bf16.msra.mxu0 %v2089_v14  ;;  %s2893_s23 = scalar_lea.hbm %s3040_s8, %s1866_s14  ;;  %s2349_s22 = sshll.u32 %s2498_s3, 4  ;;  %s2350_s22 = int_to_ptr.vmem [resolvable:$false] %s2349_s22 }
  0xc2   : > { %704 = vmatprep.subr.bf16.mxu0 %v2090_v15  ;;  %s2351_s19 = scalar_lea.vmem %s2350_s22, 512  ;;  %p2352_p10 = scmp.lt.s32.totalorder %s2895_s5, %s2350_s22 }
  0xc3   : > { %p2353_p6 = scmp.lt.s32.totalorder %s2351_s19, %s2345_s15 }
  0xc5   : > { %705 = vmatpush1.bf16.msra.mxu0 %v2092_v16  ;;  %p2354_p12 = por %p2353_p6, %p2352_p10 }
  0xc6   : > { %706 = vmatprep.subr.bf16.mxu0 %v2093_v17  ;;  %v2105_v17 = vld [vmem:[#allocation11 + $0xc4] ss:$16 sps:$4 sm:$0xff]  }
  0xc9   : > { %707 = vmatpush1.bf16.msra.mxu0 %v2095_v18  ;;  %v2108_v18 = vld [vmem:[#allocation11 + $0xcc] ss:$16 sps:$4 sm:$0xff]  }
  0xca   : > { %1146 = vmatprep.subr.bf16.mxu0 %v2102_v8  ;;  %v2152_v8 = vld [vmem:[#allocation12 + $0xb0] sm:$0xff]  }
  0xcc   : > { %725 = vmatmul.mubr.bf16.vlgmr.msra.gmra.mxu0 %v583_v21  ;;  %v2111_v21 = vld [vmem:[#allocation11 + $0xa4] ss:$16 sps:$4 sm:$0xff]  }
  0xcd   : > { %1178 = vmatprep.mubr.bf16.mxu0 %v2496_v4  ;;  %1147 = vmatpush1.bf16.msra.mxu0 %v2100_v7  ;;  %v2151_v7 = vld [vmem:[#allocation12 + $0x30] sm:$0xff]  }
  0xce   : > { %1148 = vmatprep.subr.bf16.mxu0 %v2108_v18  ;;  %v2162_v18 = vld [vmem:[#allocation12 + $0xd8] sm:$0xff]  }
 0x18c   : > { %v726_v26 = vpop.f32.mrf.mxu0 }
 0x18d   : > { %v727_v36 = vadd.f32 %v726_v26, %v605_v30  ;;  %v2109_v26 = vld [vmem:[#allocation11 + $0xa0] ss:$16 sps:$4 sm:$0xff]  }
 0x18e   : > { %v728_v28 = vpop.f32.mrf.mxu0 }
 0x18f   : > { %v729_v34 = vadd.f32 %v728_v28, %v609_v29  ;;  %v2115_v28 = vld [vmem:[#allocation11 + $0x80] ss:$16 sps:$4 sm:$0xff]  }
 0x190   : > { %v730_v31 = vpop.f32.mrf.mxu0 }
 0x191   : > { %v731_v32 = vadd.f32 %v730_v31, %v605_v30  ;;  %v2118_v30 = vld [vmem:[#allocation11 + $0x88] ss:$16 sps:$4 sm:$0xff]   ;;  %v2120_v31 = vld [vmem:[#allocation11 + $0x8c] ss:$16 sps:$4 sm:$0xff]  }
 0x192   : > { %v732_v33 = vpop.f32.mrf.mxu0 }
 0x193   : > { %v733_v35 = vadd.f32 %v732_v33, %v609_v29  ;;  %v737_v38 = vpack.c.bf16 %v731_v32, %v727_v36  ;;  %v2117_v29 = vld [vmem:[#allocation11 + $0x84] ss:$16 sps:$4 sm:$0xff]   ;;  %v2126_v33 = vld [vmem:[#allocation11 + $0x6c] ss:$16 sps:$4 sm:$0xff]  }
 0x194   : > { %v2123_v32 = vld [vmem:[#allocation11 + $0x64] ss:$16 sps:$4 sm:$0xff]  }
 0x195   : > { %v738_v37 = vpack.c.bf16 %v733_v35, %v729_v34  ;;  %v2129_v36 = vld [vmem:[#allocation11 + $0x44] ss:$16 sps:$4 sm:$0xff]  }
 0x197   : > { %762 = vmatprep.subr.bf16.mxu1 %v738_v37  ;;  %v2132_v37 = vld [vmem:[#allocation11 + $0x4c] ss:$16 sps:$4 sm:$0xff]  }
 0x198   : > { %763 = vmatpush1.bf16.msra.mxu1 %v737_v38  ;;  %v2127_v38 = vld [vmem:[#allocation11 + $0x40] ss:$16 sps:$4 sm:$0xff]  }
 0x199   : > { %1103 = vmatprep.subr.bf16.mxu1 %v2099_v6  ;;  %v2150_v6 = vld [vmem:[#allocation12 + $0xf0] sm:$0xff]  }
 0x19b   : > { %1792 = vmatmul.mubr.msk.bf16.vlgmr.msra.gmra.mxu1 %vm744_vm1, %v2096_v39  ;;  %v2130_v39 = vld [vmem:[#allocation11 + $0x48] ss:$16 sps:$4 sm:$0xff]  }
 0x19c   : > { %1135 = vmatprep.mubr.bf16.mxu1 %v2496_v4  ;;  %1104 = vmatpush1.bf16.msra.mxu1 %v2097_v5  ;;  %v2149_v5 = vld [vmem:[#allocation12 + $0x70] sm:$0xff]  }
 0x19d   : > { %1105 = vmatprep.subr.bf16.mxu1 %v2105_v17  ;;  %v2161_v17 = vld [vmem:[#allocation12 + $0x58] sm:$0xff]  }
 0x25b   : > { %v782_v44 = vpop.f32.mrf.mxu1 }
 0x25c   : > { %v803_v54 = vadd.f32 %v796_v48, %v782_v44  ;;  %v2141_v44 = vld [vmem:[#allocation11 + $0x4] ss:$16 sps:$4 sm:$0xff]  }
 0x25d   : > { %v784_v45 = vpop.f32.mrf.mxu1 }
 0x25e   : > { %v804_v49 = vadd.f32 %v800_v43, %v784_v45  ;;  %v2144_v45 = vld [vmem:[#allocation11 + $0xc] ss:$16 sps:$4 sm:$0xff]  }
 0x25f   : > { %v786_v50 = vpop.f32.mrf.mxu1 }
 0x260   : > { %v839_v51 = vsub.f32 %v1793_v46, %v804_v49  ;;  %v805_v56 = vadd.f32 %v796_v48, %v786_v50  ;;  %v2145_v48 = vld [vmem:[#allocation12 + $0x78] sm:$0xff]  }
 0x261   : > { %v788_v52 = vpop.f32.mrf.mxu1  ;;  %v2146_v49 = vld [vmem:[#allocation12 + $0xf8] sm:$0xff]  }
 0x262   : > { %v841_v55 = vadd.f32 %v839_v51, %v729_v34  ;;  %v806_v57 = vadd.f32 %v800_v43, %v788_v52  ;;  %v2121_v34 = vld [vmem:[#allocation11 + $0x60] ss:$16 sps:$4 sm:$0xff]   ;;  %v2136_v43 = vld [vmem:[#allocation11 + $0x28] ss:$16 sps:$4 sm:$0xff]  }
 0x264   : > { %v809_v58 = vcombine.high %v805_v56, %v806_v57  ;;  %v840_v59 = vsub.f32 %v1793_v46, %v806_v57  ;;  %v843_v60 = vadd.f32 %v841_v55, %v803_v54  ;;  %v2139_v46 = vld [vmem:[#allocation11] ss:$16 sps:$4 sm:$0xff]  }
 0x266   : > { %v816_v61 = vrot.slane %v809_v58, %v815_v53  ;;  %v842_v62 = vadd.f32 %v840_v59, %v733_v35  ;;  %v845_v63 = vadd.f32 %v843_v60, %v581_v19  ;;  %v2103_v19 = vld [vmem:[#allocation11 + $0xc0] ss:$16 sps:$4 sm:$0xff]   ;;  %v2124_v35 = vld [vmem:[#allocation11 + $0x68] ss:$16 sps:$4 sm:$0xff]   ;;  %v1794_v58 = vld [vmem:[%s3032_s2] ss:$0 sm:$0xff] }
 0x267   : > { %1106 = vmatpush1.bf16.msra.mxu1 %v2103_v19  ;;  %v2163_v19 = vld [vmem:[#allocation12 + $0x18] sm:$0xff]  }
 0x268   : > { %v817_v0 = vcombine.high %v816_v61, %v816_v61  ;;  %847 = vadd.xlane.f32.xlu0 %v845_v63  ;;  %v844_v1 = vadd.f32 %v842_v62, %v805_v56  ;;  %1107 = vmatprep.subr.bf16.mxu1 %v2111_v21  ;;  %v1795_v62 = vld [vmem:[%s3033_s9] ss:$0 sm:$0xff]  ;;  %s3039_s9 = sld [smem:[#allocation25_spill]] }
 0x269   : > { %v2165_v21 = vld [vmem:[#allocation12 + $0x50] sm:$0xff]  }
 0x26a   : > { %v824_v2 = vrot.slane %v817_v0, %v815_v53  ;;  %v846_v3 = vadd.f32 %v844_v1, %v582_v20  ;;  %v2106_v20 = vld [vmem:[#allocation11 + $0xc8] ss:$16 sps:$4 sm:$0xff]  }
 0x26b   : > { %1149 = vmatpush1.bf16.msra.mxu0 %v2106_v20  ;;  %1108 = vmatpush1.bf16.msra.mxu1 %v2109_v26  ;;  %v2164_v20 = vld [vmem:[#allocation12 + $0x98] sm:$0xff]   ;;  %v2167_v26 = vld [vmem:[#allocation12 + $0x10] sm:$0xff]  }
 0x26c   : > { %v825_v4 = vcombine.high %v824_v2, %v824_v2  ;;  %849 = vadd.xlane.f32.xlu0 %v846_v3  ;;  %1150 = vmatprep.subr.bf16.mxu0 %v2114_v22  ;;  %v2147_v2 = vld [vmem:[#allocation12 + $0x38] sm:$0xff]   ;;  %v2166_v22 = vld [vmem:[#allocation12 + $0xd0] sm:$0xff]  }
 0x26d   : > { %1109 = vmatprep.subr.bf16.mxu1 %v2117_v29  ;;  %v2170_v29 = vld [vmem:[#allocation12 + $0xc8] sm:$0xff]  }
 0x26e   : > { %831 = vst.msk [vmem:[#allocation2] sm:$0x3] %vm829_vm2, %v825_v4  ;;  %p3041_p7 = scmp.ne.s32.totalorder %s3039_s9, 0 }
 0x26f   : > { %1151 = vmatpush1.bf16.msra.mxu0 %v2112_v27  ;;  %1110 = vmatpush1.bf16.msra.mxu1 %v2115_v28  ;;  %v2168_v27 = vld [vmem:[#allocation12 + $0x90] sm:$0xff]   ;;  %v2169_v28 = vld [vmem:[#allocation12 + $0x48] sm:$0xff]  }
 0x270   : > { %1152 = vmatprep.subr.bf16.mxu0 %v2120_v31  ;;  %1111 = vmatprep.subr.bf16.mxu1 %v2123_v32  ;;  %v2172_v31 = vld [vmem:[#allocation12 + $0x88] sm:$0xff]   ;;  %v2173_v32 = vld [vmem:[#allocation12 + $0x40] sm:$0xff]   ;;  %p2347_p11 = pnand %p2346_p9, %p3041_p7 }
 0x272   : > { %p2348_p1 = pneg %p2347_p11 }
 0x273   : > { %1153 = vmatpush1.bf16.msra.mxu0 %v2118_v30  ;;  %1112 = vmatpush1.bf16.msra.mxu1 %v2121_v34  ;;  %v2171_v30 = vld [vmem:[#allocation12 + $0x8] sm:$0xff]   ;;  %v2175_v34 = vld [vmem:[#allocation12] sm:$0xff]  }
 0x274   : > { %1154 = vmatprep.subr.bf16.mxu0 %v2126_v33  ;;  %1113 = vmatprep.subr.bf16.mxu1 %v2129_v36  ;;  %v2174_v33 = vld [vmem:[#allocation12 + $0xc0] sm:$0xff]   ;;  %v937_v36 = vsub.s32 3, %v2829_v23  ;;  %p2355_p4 = pnand %p2354_p12, %p2348_p1 }
 0x277   : > { %1155 = vmatpush1.bf16.msra.mxu0 %v2124_v35  ;;  %1114 = vmatpush1.bf16.msra.mxu1 %v2127_v38  ;;  %v2176_v35 = vld [vmem:[#allocation12 + $0x80] sm:$0xff]   ;;  %v921_v38 = vld [vmem:[%s3034_s10] sm:$0xf] }
 0x278   : > { %1156 = vmatprep.subr.bf16.mxu0 %v2132_v37  ;;  %1115 = vmatprep.subr.bf16.mxu1 %v2135_v40  ;;  %v933_v37 = vsub.s32 2, %v2829_v23 }
 0x27b   : > { %1157 = vmatpush1.bf16.msra.mxu0 %v2130_v39  ;;  %1116 = vmatpush1.bf16.msra.mxu1 %v2133_v42  ;;  %v938_v42 = vrot.slane %v921_v38, %v937_v36 }
 0x27c   : > { %1158 = vmatprep.subr.bf16.mxu0 %v2138_v41  ;;  %1117 = vmatprep.subr.bf16.mxu1 %v2141_v44  ;;  %v930_v41 = vrot.slane %v921_v38, %v2832_v24  ;;  %v934_v44 = vrot.slane %v921_v38, %v933_v37 }
 0x27f   : > { %1159 = vmatpush1.bf16.msra.mxu0 %v2136_v43  ;;  %1118 = vmatpush1.bf16.msra.mxu1 %v2139_v46  ;;  %v926_v43 = vrot.slane %v921_v38, %v2835_v25 }
 0x280   : > { %1160 = vmatprep.subr.bf16.mxu0 %v2144_v45  ;;  %1869 = vmatprep.subr.bf16.mxu1 %v2145_v48 }
 0x283   : > { %1161 = vmatpush1.bf16.msra.mxu0 %v2142_v47 }
 0x284   : > { %1891 = vmatprep.subr.bf16.mxu0 %v2146_v49 }
 0x2f1   : > { %v848_v9 = vpop.xlane.xlu0 %847 }
 0x2f2   : > { %v852_v10 = vmul.f32 0.0078125, %v848_v9  ;;  %v2153_v9 = vld [vmem:[#allocation12 + $0x68] sm:$0xff]  }
 0x2f4   : > { %v2846_v11 = vsub.f32 %v845_v63, %v852_v10  ;;  %v2154_v10 = vld [vmem:[#allocation12 + $0xe8] sm:$0xff]  }
 0x2f5   : > { %v850_v12 = vpop.xlane.xlu0 %849 }
 0x2f6   : > { %v853_v13 = vmul.f32 0.0078125, %v850_v12  ;;  %v856_v14 = vmul.f32 %v2846_v11, %v2846_v11  ;;  %v2156_v12 = vld [vmem:[#allocation12 + $0xa8] sm:$0xff]  }
 0x2f8   : > { %v2850_v15 = vsub.f32 %v846_v3, %v853_v13  ;;  %858 = vadd.xlane.f32.xlu1 %v856_v14  ;;  %v2148_v3 = vld [vmem:[#allocation12 + $0xb8] sm:$0xff]   ;;  %v2157_v13 = vld [vmem:[#allocation12 + $0x60] sm:$0xff]  }
 0x2f9   : > { %v2158_v14 = vld [vmem:[#allocation12 + $0xe0] sm:$0xff]  }
 0x2fa   : > { %v857_v16 = vmul.f32 %v2850_v15, %v2850_v15 }
 0x2fc   : > { %860 = vadd.xlane.f32.xlu1 %v857_v16  ;;  %v2160_v16 = vld [vmem:[#allocation12 + $0xa0] sm:$0xff]  }
 0x381   : > { %v859_v50 = vpop.xlane.xlu1 %858 }
 0x382   : > { %v862_v51 = vmul.f32 0.0078125, %v859_v50 }
 0x384   : > { %v864_v52 = vadd.f32 1e-05, %v862_v51 }
 0x385   : > { %v861_v53 = vpop.xlane.xlu1 %860 }
 0x386   : > { %2177 = vrsqrt.f32 %v864_v52  ;;  %v863_v54 = vmul.f32 0.0078125, %v861_v53 }
 0x388   : > { %v865_v55 = vadd.f32 1e-05, %v863_v54 }
 0x38a   : > { %2179 = vrsqrt.f32 %v865_v55 }
 0x393   : > { %v2178_v56 = vpop.eup %2177 }
 0x394   : > { %v868_v57 = vmul.f32 %v2178_v56, %v2846_v11  ;;  %v2155_v11 = vld [vmem:[#allocation12 + $0x28] sm:$0xff]  }
 0x396   : > { %v877_v61 = vmul.f32 %v1794_v58, %v868_v57 }
 0x397   : > { %v2180_v59 = vpop.eup %2179 }
 0x398   : > { %v869_v60 = vmul.f32 %v2180_v59, %v2850_v15  ;;  %v2862_v0 = vadd.f32 %v1795_v62, %v877_v61  ;;  %v2159_v15 = vld [vmem:[#allocation12 + $0x20] sm:$0xff]  }
 0x39a   : > { %v878_v63 = vmul.f32 %v1794_v58, %v869_v60 }
 0x39c   : > { %v2864_v1 = vadd.f32 %v1795_v62, %v878_v63 }
 0x39e   : > { %v888_v4 = vpack.c.bf16 %v2864_v1, %v2862_v0 }
 0x3a0   : > { %1136 = vmatmul.mubr.bf16.vlgmr.msra.gmra.mxu1 %v888_v4  ;;  %1179 = vmatmul.mubr.bf16.vlgmr.msra.gmra.mxu0 %v888_v4 }
 0x3a1   : > { %1870 = vmatpush3.bf16.msra.mxu1 %v2147_v2  ;;  %1892 = vmatpush3.bf16.msra.mxu0 %v2148_v3 }
 0x3a2   : > { %1871 = vmatprep.subr.bf16.mxu1 %v2149_v5  ;;  %1893 = vmatprep.subr.bf16.mxu0 %v2150_v6 }
 0x3a5   : > { %1872 = vmatpush3.bf16.msra.mxu1 %v2151_v7  ;;  %1894 = vmatpush3.bf16.msra.mxu0 %v2152_v8  ;;  %v1828_v8 = vld [vmem:[%s3035_s20] ss:$0 sm:$0xff]  ;;  %s1591_s20 = scalar_lea.sflag [#allocation5], %s2794_s16 }
 0x3a6   : > { %1873 = vmatprep.subr.bf16.mxu1 %v2153_v9  ;;  %1895 = vmatprep.subr.bf16.mxu0 %v2154_v10 }
 0x3a9   : > { %1874 = vmatpush3.bf16.msra.mxu1 %v2155_v11  ;;  %1896 = vmatpush3.bf16.msra.mxu0 %v2156_v12 }
 0x3aa   : > { %1875 = vmatprep.subr.bf16.mxu1 %v2157_v13  ;;  %1897 = vmatprep.subr.bf16.mxu0 %v2158_v14 }
 0x3ad   : > { %1876 = vmatpush3.bf16.msra.mxu1 %v2159_v15  ;;  %1898 = vmatpush3.bf16.msra.mxu0 %v2160_v16 }
 0x3ae   : > { %1877 = vmatprep.subr.bf16.mxu1 %v2161_v17  ;;  %1899 = vmatprep.subr.bf16.mxu0 %v2162_v18 }
 0x3b1   : > { %1878 = vmatpush3.bf16.msra.mxu1 %v2163_v19  ;;  %1900 = vmatpush3.bf16.msra.mxu0 %v2164_v20 }
 0x3b2   : > { %1879 = vmatprep.subr.bf16.mxu1 %v2165_v21  ;;  %1901 = vmatprep.subr.bf16.mxu0 %v2166_v22 }
 0x3b5   : > { %1880 = vmatpush3.bf16.msra.mxu1 %v2167_v26  ;;  %1902 = vmatpush3.bf16.msra.mxu0 %v2168_v27 }
 0x3b6   : > { %1881 = vmatprep.subr.bf16.mxu1 %v2169_v28  ;;  %1903 = vmatprep.subr.bf16.mxu0 %v2170_v29 }
 0x3b9   : > { %1882 = vmatpush3.bf16.msra.mxu1 %v2171_v30  ;;  %1904 = vmatpush3.bf16.msra.mxu0 %v2172_v31 }
 0x3ba   : > { %1883 = vmatprep.subr.bf16.mxu1 %v2173_v32  ;;  %1905 = vmatprep.subr.bf16.mxu0 %v2174_v33 }
 0x3bd   : > { %1884 = vmatpush3.bf16.msra.mxu1 %v2175_v34  ;;  %1906 = vmatpush3.bf16.msra.mxu0 %v2176_v35 }
 0x460   : > { %v1137_v39 = vpop.f32.mrf.mxu1  ;;  %v1180_v40 = vpop.f32.mrf.mxu0 }
 0x461   : > { %v1138_v52 = vadd.f32 %v1137_v39, %v926_v43  ;;  %v1181_v53 = vadd.f32 %v1180_v40, %v934_v44 }
 0x462   : > { %v1139_v45 = vpop.f32.mrf.mxu1  ;;  %v1182_v46 = vpop.f32.mrf.mxu0 }
 0x463   : > { %v1140_v49 = vadd.f32 %v1139_v45, %v930_v41  ;;  %v1183_v50 = vadd.f32 %v1182_v46, %v938_v42  ;;  %v1189_v62 = vmax.f32 %v1138_v52, 0.0  ;;  %v1191_v63 = vmax.f32 %v1181_v53, 0.0 }
 0x464   : > { %v1141_v47 = vpop.f32.mrf.mxu1  ;;  %v1184_v48 = vpop.f32.mrf.mxu0 }
 0x465   : > { %v1142_v51 = vadd.f32 %v1141_v47, %v926_v43  ;;  %v1185_v23 = vadd.f32 %v1184_v48, %v934_v44  ;;  %v1190_v59 = vmax.f32 %v1140_v49, 0.0  ;;  %v1192_v60 = vmax.f32 %v1183_v50, 0.0  ;;  %v1862_v43 = vld [vmem:[%s3038_s25] ss:$0 sm:$0xff] }
 0x466   : > { %v1143_v54 = vpop.f32.mrf.mxu1  ;;  %v1186_v55 = vpop.f32.mrf.mxu0 }
 0x467   : > { %v1144_v56 = vadd.f32 %v1143_v54, %v930_v41  ;;  %v1187_v57 = vadd.f32 %v1186_v55, %v938_v42  ;;  %v1193_v58 = vmax.f32 %v1142_v51, 0.0  ;;  %v1195_v24 = vmax.f32 %v1185_v23, 0.0  ;;  %v1861_v41 = vld [vmem:[%s3037_s21] ss:$0 sm:$0xff] }
 0x469   : > { %v1194_v25 = vmax.f32 %v1144_v56, 0.0  ;;  %v1196_v61 = vmax.f32 %v1187_v57, 0.0  ;;  %v1197_v4 = vpack.c.bf16 %v1193_v58, %v1189_v62  ;;  %v1199_v5 = vpack.c.bf16 %v1195_v24, %v1191_v63 }
 0x46b   : > { %v1198_v2 = vpack.c.bf16 %v1194_v25, %v1190_v59  ;;  %v1200_v3 = vpack.c.bf16 %v1196_v61, %v1192_v60 }
 0x46d   : > { %1496 = vmatprep.mubr.bf16.mxu1 %v1198_v2  ;;  %1537 = vmatprep.mubr.bf16.mxu0 %v1200_v3 }
 0x46e   : > { %1497 = vmatmul.mubr.bf16.vlgmr.msra.gmra.mxu1 %v1197_v4  ;;  %1538 = vmatmul.mubr.bf16.vlgmr.msra.gmra.mxu0 %v1199_v5 }
 0x52e   : > { %v1885_v6 = vpop.f32.mrf.mxu1  ;;  %v1907_v7 = vpop.f32.mrf.mxu0 }
 0x530   : > { %v1886_v9 = vpop.f32.mrf.mxu1  ;;  %v1908_v10 = vpop.f32.mrf.mxu0 }
 0x531   : > { %v1887_v11 = vadd.f32 %v1886_v9, %v1885_v6  ;;  %v1909_v15 = vadd.f32 %v1908_v10, %v1907_v7 }
 0x532   : > { %v1888_v12 = vpop.f32.mrf.mxu1  ;;  %v1910_v13 = vpop.f32.mrf.mxu0 }
 0x533   : > { %v1499_v14 = vadd.f32 %v1887_v11, %v1828_v8 }
 0x534   : > { %v1889_v16 = vpop.f32.mrf.mxu1  ;;  %v1911_v17 = vpop.f32.mrf.mxu0 }
 0x535   : > { %v1540_v18 = vadd.f32 %v1909_v15, %v1499_v14  ;;  %v1890_v19 = vadd.f32 %v1889_v16, %v1888_v12  ;;  %v1912_v21 = vadd.f32 %v1911_v17, %v1910_v13 }
 0x537   : > { %v1502_v20 = vadd.f32 %v1890_v19, %v1828_v8  ;;  %v1546_v22 = vadd.f32 %v1540_v18, %v2862_v0 }
 0x539   : > { %v1543_v26 = vadd.f32 %v1912_v21, %v1502_v20  ;;  %1548 = vadd.xlane.f32.xlu0 %v1546_v22 }
 0x53b   : > { %v1547_v27 = vadd.f32 %v1543_v26, %v2864_v1 }
 0x53d   : > { %1550 = vadd.xlane.f32.xlu1 %v1547_v27 }
 0x5c2   : > { %v1549_v28 = vpop.xlane.xlu0 %1548 }
 0x5c3   : > { %v1552_v29 = vmul.f32 0.0078125, %v1549_v28 }
 0x5c5   : > { %v1554_v30 = vsub.f32 %v1546_v22, %v1552_v29 }
 0x5c6   : > { %v1551_v31 = vpop.xlane.xlu1 %1550 }
 0x5c7   : > { %v1553_v32 = vmul.f32 0.0078125, %v1551_v31  ;;  %v1556_v33 = vmul.f32 %v1554_v30, %v1554_v30 }
 0x5c9   : > { %v1555_v34 = vsub.f32 %v1547_v27, %v1553_v32  ;;  %1558 = vadd.xlane.f32.xlu0 %v1556_v33 }
 0x5cb   : > { %v1557_v35 = vmul.f32 %v1555_v34, %v1555_v34 }
 0x5cd   : > { %1560 = vadd.xlane.f32.xlu1 %v1557_v35 }
 0x652   : > { %v1559_v36 = vpop.xlane.xlu0 %1558 }
 0x653   : > { %v1562_v37 = vmul.f32 0.0078125, %v1559_v36 }
 0x655   : > { %v1564_v0 = vadd.f32 1e-05, %v1562_v37 }
 0x656   : > { %v1561_v38 = vpop.xlane.xlu1 %1560 }
 0x657   : > { %2181 = vrsqrt.f32 %v1564_v0  ;;  %v1563_v1 = vmul.f32 0.0078125, %v1561_v38 }
 0x659   : > { %v1565_v39 = vadd.f32 1e-05, %v1563_v1 }
 0x65b   : > { %2183 = vrsqrt.f32 %v1565_v39 }
 0x664   : > { %v2182_v40 = vpop.eup %2181 }
 0x665   : > { %v1568_v42 = vmul.f32 %v2182_v40, %v1554_v30 }
 0x667   : > { %v1577_v44 = vmul.f32 %v1861_v41, %v1568_v42 }
 0x668   : > { %v2184_v45 = vpop.eup %2183 }
 0x669   : > { %v1569_v46 = vmul.f32 %v2184_v45, %v1555_v34  ;;  %v1586_v47 = vadd.f32 %v1862_v43, %v1577_v44 }
 0x66b   : > { %v1578_v48 = vmul.f32 %v1861_v41, %v1569_v46  ;;  %1588 = vst [vmem:[%s2824_s24] sm:$0xff] %v1586_v47 }
 0x66d   : > { %v1587_v49 = vadd.f32 %v1862_v43, %v1578_v48 }
 0x66f   : > { %1589 = vst [vmem:[%s2824_s24 + $0x8] sm:$0xff] %v1587_v49 }
 0x670   : > { %2358 = shalt.err (!%p2355_p4)
}
 0x671   : > { %s2359_s24 = scalar_lea.hbm %s2893_s23, 256  ;;  %s2363_s13 = scalar_lea.hbm %s3040_s8, 1024 }
 0x672   : > { %p2360_p13 = scmp.ne.s32.totalorder %s2893_s23, %s2359_s24  ;;  %p2364_p2 = scmp.lt.s32.totalorder %s2893_s23, %s3040_s8 }
 0x673   : > { %p2365_p8 = scmp.lt.s32.totalorder %s2363_s13, %s2359_s24 }
 0x674   : > { %p2361_p3 = pnand %p2360_p13, %p3041_p7 }
 0x675   : > { %p2366_p0 = por %p2365_p8, %p2364_p2 }
 0x676   : > { %p2362_p5 = pneg %p2361_p3 }
 0x678   : > { %p2367_p9 = pnand %p2366_p0, %p2362_p5 }
 0x67a   : > { %2370 = shalt.err (!%p2367_p9)
}
 0x67b   : > { %s2499_s6 = smov 128   ;;  %s2500_s14 = smov 8  }
 0x67c   : > { %1933 = dma.vmem_to_hbm [thread:$0]  (%p3041_p7), %s2895_s5, 256, %s2893_s23, %s1591_s20, %s2499_s6, %s2499_s6, %s2500_s14  }
 0x67d PF: > { %s3042_s28 = sld [smem:[#allocation21_spill]]  ;;  %p1968_p11 = scmp.ge.s32.totalorder %s2481_s18, 2 }
 0x67e   : > { %s3043_s10 = sld [smem:[#allocation27_spill]] }
 0x683   : > { %s1621_s15 = sand.u32 1, %s3042_s28  }
 0x684   : > { %p3044_p1 = scmp.ne.s32.totalorder %s3043_s10, 0  ;;  %s1622_s3 = scalar_lea.sflag [#allocation5], %s1621_s15 }
 0x686   : > { %p1956_p10 = pnand %p1968_p11, %p3044_p1 }
 0x688   : > { %p1957_p6 = pneg %p1956_p10 }
 0x68a   : > { %2436 = dma.done.wait (%p1957_p6), %s1622_s3, 256  }
 0x68b   : > { %2438 = vsyncadd (%p1957_p6), %s1622_s3, 4294967040  ;;  %s34_s18 = sadd.s32 1, %s2481_s18   ;;  %s3045_s14 = sld [smem:[#allocation23_spill]] }
 0x68c   : > { %p31_p12 = scmp.ge.s32.totalorder %s34_s18, 6   ;;  %s3046_s16 = sld [smem:[#allocation24_spill]] }
 0x68d   : > { %s3047_s9 = sld [smem:[#allocation26_spill]]  ;;  %s3048_s25 = smov %s2445_s26 }
 0x68e   : > { %s3049_s26 = smov %s2449_s27  ;;  %s3050_s27 = smov %s2763_s12 }
 0x68f   : > { %s3051_s28 = smov %s2457_s29  ;;  %s3052_s29 = smov %s2461_s30 }
 0x690   : > { %s3053_s30 = smov %s2735_s7  ;;  %s3054_s15 = smov %s2477_s17 }
 0x691   :  { %33 = sbr.rel (!%p31_p12) target bundleno = 25 (0x19), region = 150 }
 0x693   : > { %s3055_s17 = smov %s3047_s9 }
 0x696   :  { %1627 = vsyncpa [#allocation4], 1 }
 0x697   :  { %1629 = vsyncpa [#allocation4 + $0x1], 1 }
 0x698   :  { %1630 = vsyncpa [#allocation7], 1 }
 0x699   :  { %1632 = vsyncpa [#allocation7 + $0x1], 1 }
 0x69a   :  { %1633 = vsyncpa [#allocation10], 1 }
 0x69b   :  { %1634 = vsyncpa [#allocation13], 1 }
 0x69c   :  { %1635 = vsyncpa [#allocation5], 1 }
 0x69d   :  { %1637 = vsyncpa [#allocation5 + $0x1], 1 }

</bundles_post_ra>
